<compile_context>
chip_gen: v7x
topology: tpu7x:2x2x1
jax: 0.10.0
libtpu: 0.0.40
codegen_flags: <defaults>
</compile_context>

<pallas_src>
import jax
import jax.numpy as jnp
from jax.experimental import pallas as pl
from jax.experimental.pallas import tpu as pltpu

IN_FEATURES = 20
OUT_FEATURES = 12


def _linear_sub_kernel(x_ref, w_ref, b_ref, x2_ref, v1_ref, v2_ref):
    """Single MXU push + two broadcast VPU adds; everything VMEM-resident.

    x_ref:  (B, 20)  activations
    w_ref:  (20, 12) weight, already in [K, N] layout (pre-transposed at init)
    b_ref:  (1, 12)  bias
    x2_ref: (1, 12)  subtrahend
    v1_ref: (B, 12)  linear output
    v2_ref: (B, 12)  v1 - x2
    """
    x = x_ref[...]
    w = w_ref[...]
    b = b_ref[...]
    x2 = x2_ref[...]

    v1 = jnp.dot(x, w, preferred_element_type=jnp.float32) + b  # (B, 12)
    v1_ref[...] = v1.astype(v1_ref.dtype)
    v2_ref[...] = (v1 - x2).astype(v2_ref.dtype)


def model_forward(x1, weight_t, bias, x2):
    """x1: (B, 20) f32; weight_t: (20, 12) f32 ([K, N] layout);
    bias: (1, 12) f32; x2: (12,) f32.  Returns (v1, v2), each (B, 12) f32."""
    B = x1.shape[0]
    x2_row = x2.reshape(1, OUT_FEATURES)  # layout-only view, no data movement

    vmem = lambda: pl.BlockSpec(memory_space=pltpu.MemorySpace.VMEM)

    v1, v2 = pl.pallas_call(
        _linear_sub_kernel,
        out_shape=(
            jax.ShapeDtypeStruct((B, OUT_FEATURES), jnp.float32),
            jax.ShapeDtypeStruct((B, OUT_FEATURES), jnp.float32),
        ),
        in_specs=[vmem(), vmem(), vmem(), vmem()],
        out_specs=(vmem(), vmem()),
    )(x1, weight_t, bias, x2_row)

    return v1, v2


def init_params(key):
    """Deterministic init mimicking torch.nn.Linear default (U(-k, k), k=1/sqrt(fan_in)).

    Weight is returned already transposed to (20, 12) = [K, N]; bias as (1, 12).
    Both are static parameters, so this one-time layout choice is free at run time.
    """
    kw, kb = jax.random.split(key)
    bound = 1.0 / (IN_FEATURES ** 0.5)
    weight = jax.random.uniform(
        kw, (OUT_FEATURES, IN_FEATURES), jnp.float32, minval=-bound, maxval=bound
    )
    bias = jax.random.uniform(
        kb, (OUT_FEATURES,), jnp.float32, minval=-bound, maxval=bound
    )
    weight_t = weight.T  # (20, 12), one-time, outside the hot path
    bias_row = bias.reshape(1, OUT_FEATURES)
    return weight_t, bias_row


if __name__ == "__main__":
    key = jax.random.PRNGKey(0)
    k_param, k_x1, k_x2 = jax.random.split(key, 3)

    weight_t, bias_row = init_params(k_param)
    x1 = jax.random.normal(k_x1, (4, IN_FEATURES), jnp.float32)
    # Original driver uses x2 of shape (20,), which cannot broadcast with
    # (4, 12); we use the only runnable shape, (12,).
    x2 = jax.random.normal(k_x2, (OUT_FEATURES,), jnp.float32)

    v1, v2 = model_forward(x1, weight_t, bias_row, x2)
    jax.block_until_ready((v1, v2))

    # Reference check in plain JAX (same formulation as the PyTorch model).
    v1_ref = x1 @ weight_t + bias_row
    v2_ref = v1_ref - x2
    assert jnp.allclose(v1, v1_ref, atol=1e-5, rtol=1e-5)
    assert jnp.allclose(v2, v2_ref, atol=1e-5, rtol=1e-5)

    print("KERNEL_OK")
</pallas_src>

<mosaic_0001>
module attributes {stable_mosaic.version = 11 : i64} {
  func.func @_linear_sub_kernel(%arg0: memref<4x20xf32, #tpu.memory_space<vmem>>, %arg1: memref<20x12xf32, #tpu.memory_space<vmem>>, %arg2: memref<1x12xf32, #tpu.memory_space<vmem>>, %arg3: memref<1x12xf32, #tpu.memory_space<vmem>>, %arg4: memref<4x12xf32, #tpu.memory_space<vmem>>, %arg5: memref<4x12xf32, #tpu.memory_space<vmem>>) attributes {dimension_semantics = [], scalar_prefetch = 0 : i64, scratch_operands = 0 : i64, tpu.core_type = #tpu.core_type<tc>} {
    %c0 = arith.constant 0 : index
    %c0_0 = arith.constant 0 : index
    %0 = vector.load %arg0[%c0, %c0_0] : memref<4x20xf32, #tpu.memory_space<vmem>>, vector<4x20xf32>
    %c0_1 = arith.constant 0 : index
    %c0_2 = arith.constant 0 : index
    %1 = vector.load %arg1[%c0_1, %c0_2] : memref<20x12xf32, #tpu.memory_space<vmem>>, vector<20x12xf32>
    %c0_3 = arith.constant 0 : index
    %c0_4 = arith.constant 0 : index
    %2 = vector.load %arg2[%c0_3, %c0_4] : memref<1x12xf32, #tpu.memory_space<vmem>>, vector<1x12xf32>
    %c0_5 = arith.constant 0 : index
    %c0_6 = arith.constant 0 : index
    %3 = vector.load %arg3[%c0_5, %c0_6] : memref<1x12xf32, #tpu.memory_space<vmem>>, vector<1x12xf32>
    %cst = arith.constant dense<0.000000e+00> : vector<4x12xf32>
    %4 = tpu.matmul %0, %1, %cst {dimension_numbers = #tpu.dot_dimension_numbers<[1], [0], [0], [1], [0, 0, 1, 1], [], []>} : vector<4x20xf32>, vector<20x12xf32>, vector<4x12xf32> -> vector<4x12xf32>
    %5 = vector.broadcast %2 : vector<1x12xf32> to vector<4x12xf32>
    %6 = arith.addf %4, %5 : vector<4x12xf32>
    %c0_7 = arith.constant 0 : index
    %c0_8 = arith.constant 0 : index
    %7 = vector.load %arg4[%c0_7, %c0_8] : memref<4x12xf32, #tpu.memory_space<vmem>>, vector<4x12xf32>
    tpu.vector_store %arg4[%c0_7, %c0_8], %6 {strides = array<i32>} : memref<4x12xf32, #tpu.memory_space<vmem>>, vector<4x12xf32>,
    %8 = vector.broadcast %3 : vector<1x12xf32> to vector<4x12xf32>
    %9 = arith.subf %6, %8 : vector<4x12xf32>
    %c0_9 = arith.constant 0 : index
    %c0_10 = arith.constant 0 : index
    %10 = vector.load %arg5[%c0_9, %c0_10] : memref<4x12xf32, #tpu.memory_space<vmem>>, vector<4x12xf32>
    tpu.vector_store %arg5[%c0_9, %c0_10], %9 {strides = array<i32>} : memref<4x12xf32, #tpu.memory_space<vmem>>, vector<4x12xf32>,
    return
  }
}

</mosaic_0001>

<bundles_post_ra>
// kernel: tpu_custom_call.1
= control target key start
LH: loop header
LB: loop body
LE: loop exit
PB: predicated region body
PF: predicated region fallthrough
CT: control target
= control target key end

     0   :  { %11 = vsyncpa [#allocation3], 0  ;;  %v222_v2 = vmov 0.0|0.0   ;;  %vm223_vm0 = vmmov 0   ;;  %v224_v4 = vmov 0.0   ;;  %s301_s0 = inlined_call_operand.vmem [shape: f32[4,20], index: 0, kind: input, shape index: {}]   ;;  %s302_s1 = inlined_call_operand.vmem [shape: f32[20,12], index: 1, kind: input, shape index: {}]   ;;  %s303_s2 = inlined_call_operand.vmem [shape: f32[1,12], index: 2, kind: input, shape index: {}]   ;;  %s304_s3 = inlined_call_operand.vmem [shape: f32[1,12], index: 3, kind: input, shape index: {}]   ;;  %s305_s4 = inlined_call_operand.hbm [shape: f32[4,12], index: 4, kind: output, shape index: {0}]   ;;  %s306_s5 = inlined_call_operand.hbm [shape: f32[4,12], index: 5, kind: output, shape index: {1}]  }
   0x1   :  { %v22_v0 = vld [vmem:[%s302_s1] sm:$0xff]  ;;  %v23_v1 = vld [vmem:[%s302_s1 + $0x8] sm:$0xff]  ;;  %166 = vmatprep.subr.bf16.mxu0 %v222_v2  ;;  %163 = vmatprep.mubr.msk.f32.mxu0 %vm223_vm0, %v224_v4 }
   0x2   :  { %v167_v3 = vpack.c.bf16 %v23_v1, %v22_v0 }
   0x3   :  { %12 = vsyncpa [#allocation5], 0  ;;  %v24_v5 = vld [vmem:[%s302_s1 + $0x10] sm:$0xf]  ;;  %vm37_vm1 = vcmask 1043456   ;;  %vm33_vm2 = vcmask 162816  }
   0x4   :  { %168 = vmatpush3.bf16.msra.mxu0 %v167_v3  ;;  %v21_v6 = vld [vmem:[%s301_s0] sm:$0xf]  ;;  %s225_s28 = smov [#allocation2]   ;;  %vm111_vm3 = vcmask 93184   ;;  %s226_s1 = smov [#allocation4]  }
   0x5   :  { %161 = vmatprep.subr.mxu0 %v224_v4  ;;  %v149_v7 = vld [vmem:[%s303_s2] ss:$0 sm:$0xff]  ;;  %s127_s29 = sshll.u32 %s225_s28, 4  ;;  %s137_s7 = sshll.u32 %s226_s1, 4  ;;  %s128_s29 = int_to_ptr.vmem [resolvable:$true] %s127_s29  ;;  %s138_s7 = int_to_ptr.vmem [resolvable:$true] %s137_s7 }
   0x6   :  { %v152_v8 = vld [vmem:[%s304_s3] ss:$0 sm:$0xff]  ;;  %s174_s0 = scalar_lea.vmem %s128_s29, 64  ;;  %p179_p1 = scmp.lt.s32.totalorder %s128_s29, %s128_s29 }
   0x7   :  { %p175_p0 = scmp.ne.s32.totalorder %s128_s29, %s174_s0  ;;  %p180_p2 = scmp.lt.s32.totalorder %s174_s0, %s174_s0 }
   0x8   :  { %162 = vmatpush3.msk.msra.mxu0 %vm37_vm1, %v24_v5 }
   0x9   :  { %164 = vmatmul.mubr.msk.f32.vlgmr.msra.gmra.mrb[0].mxu0 %vm33_vm2, %v21_v6  ;;  %p181_p3 = por %p180_p2, %p179_p1 }
   0xb   :  { %p182_p4 = pnand %p181_p3, %p175_p0 }
  0xdc   :  { %v107_v9 = vpop.f32.mrb[0].mxu0 }
  0xdd   :  { %v108_v10 = vadd.f32 %v149_v7, %v107_v9  ;;  %v165_v11 = vpop.f32.mrb[1].mxu0 }
  0xdf   :  { %v119_v12 = vsub.f32 %v108_v10, %v152_v8  ;;  %112 = vst.msk [vmem:[#allocation2] sm:$0xf] %vm111_vm3, %v108_v10 }
  0xe0   :  { %185 = shalt.err (!%p182_p4)
}
  0xe1   :  { %s186_s8 = scalar_lea.hbm %s305_s4, 64 }
  0xe2   :  { %p187_p5 = scmp.ne.s32.totalorder %s305_s4, %s186_s8  ;;  %p190_p6 = scmp.lt.u32.totalorder %s186_s8, %s305_s4 }
  0xe4   :  { %p192_p7 = pnand %p190_p6, %p187_p5 }
  0xe6   :  { %195 = shalt.err (!%p192_p7)
}
  0xe7   :  { %130 = dma.vmem_to_hbm [thread:$0]  %s128_s29, 64, %s305_s4, [#allocation3]   ;;  %120 = vst.msk [vmem:[#allocation4] sm:$0xf] %vm111_vm3, %v119_v12 }
  0xe8   :  { %s196_s15 = scalar_lea.vmem %s138_s7, 64  ;;  %p201_p9 = scmp.lt.s32.totalorder %s138_s7, %s138_s7 }
  0xe9   :  { %p197_p8 = scmp.ne.s32.totalorder %s138_s7, %s196_s15  ;;  %p202_p10 = scmp.lt.s32.totalorder %s196_s15, %s196_s15 }
  0xeb   :  { %p203_p11 = por %p202_p10, %p201_p9 }
  0xed   :  { %p204_p12 = pnand %p203_p11, %p197_p8 }
  0xef   :  { %207 = shalt.err (!%p204_p12)
}
  0xf0   :  { %s208_s18 = scalar_lea.hbm %s306_s5, 64 }
  0xf1   :  { %p209_p13 = scmp.ne.s32.totalorder %s306_s5, %s208_s18  ;;  %p212_p0 = scmp.lt.u32.totalorder %s208_s18, %s306_s5 }
  0xf3   :  { %p214_p1 = pnand %p212_p0, %p209_p13 }
  0xf5   :  { %217 = shalt.err (!%p214_p1)
}
  0xf6   :  { %140 = dma.vmem_to_hbm [thread:$0]  %s138_s7, 64, %s306_s5, [#allocation5]  }
  0xf7   :  { %218 = dma.done.wait [#allocation3], 64  }
  0xf8   :  { %219 = vsyncadd [#allocation3], 4294967232 }
  0xf9   :  { %220 = dma.done.wait [#allocation5], 64  }
  0xfa   :  { %221 = vsyncadd [#allocation5], 4294967232 }
  0xfb   :  { %147 = vsyncpa [#allocation3], 1 }
  0xfc   :  { %148 = vsyncpa [#allocation5], 1 }

</bundles_post_ra>
